<compile_context>
chip_gen: v7x
topology: tpu7x:2x2x1
jax: 0.10.0
libtpu: 0.0.40
codegen_flags: <defaults>
</compile_context>

<pallas_src>
import functools

import jax
import jax.numpy as jnp
from jax.experimental import pallas as pl
from jax.experimental.pallas import tpu as pltpu


# --------------------------------------------------------------------------
# Kernels
# --------------------------------------------------------------------------
def attention_kernel(g_ref, q_ref, wc_ref, bc_ref, v_ref, u_ref, *, compute_dtype):
    """Module-faithful fused kernel (Conv1d projection done in-kernel).

    g_ref  [1, H, TN]  graph tile (stream dtype, native NCW layout)
    q_ref  [1, H, 1]   pre-computed Linear(hidden) column (f32)
    wc_ref [H, H]      Conv1d(H, H, 1) weight (stream dtype, resident)
    bc_ref [H, 1]      Conv1d bias (f32, resident)
    v_ref  [1, H]      V (f32, resident)
    u_ref  [1, 1, TN]  output tile (f32, lane-dense in N)
    """
    g = g_ref[0]                                                         # [H, TN]
    # Conv1d(H, H, 1) in native NCW layout: weight on the left, no transpose.
    proj = jnp.dot(wc_ref[...], g, preferred_element_type=jnp.float32)   # [H, TN] f32
    s = proj + bc_ref[...] + q_ref[0]                                    # broadcast over N lanes
    t = jnp.tanh(s.astype(compute_dtype))                                # EUP: bf16 (v6e/v7x) / f32 (v5e)
    # U = V @ tanh(...)  -> reduce over H on the MXU, lane-dense result.
    u_ref[0] = jnp.dot(v_ref[...].astype(compute_dtype), t,
                       preferred_element_type=jnp.float32)               # [1, TN]


def attention_cached_kernel(pg_ref, q_ref, v_ref, u_ref, *, compute_dtype):
    """Decode-loop kernel: the Conv1d graph projection is already cached.

    pg_ref [1, H, TN]  cached projection tile (bf16 by default)
    """
    pg = pg_ref[0].astype(compute_dtype)                                 # no-op if already bf16
    q = q_ref[0].astype(compute_dtype)                                   # [H, 1]
    t = jnp.tanh(pg + q)                                                 # [H, TN]
    u_ref[0] = jnp.dot(v_ref[...].astype(compute_dtype), t,
                       preferred_element_type=jnp.float32)               # [1, TN]


# --------------------------------------------------------------------------
# Tiling / dtype policy helpers
# --------------------------------------------------------------------------
_LANE = 128
_TILE_VMEM_BUDGET = 12 * 1024 * 1024   # bytes for the double-buffered [H, tn] graph tile
_TN_CAP = 4096                          # keep individual DMAs / tiles reasonable


def _grid_and_tile(H, N, B, dtype_bytes):
    """Pick the N tile from a VMEM budget; guarantee >=2 programs for v7x."""
    if N <= 2 * _LANE:
        tn = N
    else:
        tn = _TILE_VMEM_BUDGET // (2 * H * dtype_bytes)
        tn = min(tn, _TN_CAP, N)
        tn = max(_LANE, (tn // _LANE) * _LANE)
    grid_n = pl.cdiv(N, tn)
    # v7x has 2 TensorCores sharded over "parallel" grid axes: make sure the
    # grid doesn't collapse to a single program when B == 1.
    if B * grid_n < 2 and N > _LANE:
        tn = max(_LANE, ((pl.cdiv(N, 2) + _LANE - 1) // _LANE) * _LANE)
        grid_n = pl.cdiv(N, tn)
    return grid_n, tn


def _default_compute_dtype():
    """bf16 elementwise/tanh on v6e/v7x (native bf16 VPU/EUP); f32 elsewhere."""
    try:
        kind = jax.devices()[0].device_kind.lower()
    except Exception:
        return jnp.float32
    return jnp.bfloat16 if ("v6" in kind or "v7" in kind) else jnp.float32


def _hidden_projection(params, hidden_decoder):
    """Linear(H, H) on the decoder hidden state, hoisted out of the grid body.

    One well-shaped [B,H] x [H,H] matmul per call instead of grid_n redundant
    [H,H] x [H,1] matvecs inside the kernel (review item).
    """
    q = hidden_decoder.astype(jnp.float32) @ params["wl"].astype(jnp.float32).T
    q = q + params["bl"].astype(jnp.float32)
    return q[:, :, None]                                                 # [B, H, 1]


# --------------------------------------------------------------------------
# Wrappers
# --------------------------------------------------------------------------
def attention_forward(params, emb_graph, hidden_decoder, *,
                      stream_dtype=jnp.bfloat16, compute_dtype=None):
    """emb_graph [B, H, N] (PyTorch Conv1d NCW layout), hidden_decoder [B, H].

    Returns U [B, N].  The [B, H, N] stream is read in `stream_dtype`
    (bf16 by default -> halves HBM traffic); accumulation stays f32.
    """
    B, H, N = emb_graph.shape
    if compute_dtype is None:
        compute_dtype = _default_compute_dtype()
    sb = jnp.dtype(stream_dtype).itemsize
    grid_n, tn = _grid_and_tile(H, N, B, sb)

    g = emb_graph.astype(stream_dtype)
    wc = params["wc"].astype(stream_dtype)
    bc = params["bc"].reshape(H, 1).astype(jnp.float32)
    v = params["v"].reshape(1, H).astype(jnp.float32)
    q_col = _hidden_projection(params, hidden_decoder)                   # [B, H, 1]

    cost = pl.CostEstimate(
        flops=2 * B * H * H * N + 2 * B * H * N,
        transcendentals=B * H * N,
        bytes_accessed=int(B * H * N * sb + B * H * 4 + H * H * sb
                           + H * 4 + H * 4 + B * N * 4),
    )

    kern = functools.partial(attention_kernel, compute_dtype=compute_dtype)
    u = pl.pallas_call(
        kern,
        out_shape=jax.ShapeDtypeStruct((B, 1, N), jnp.float32),
        grid=(B, grid_n),
        in_specs=[
            pl.BlockSpec((1, H, tn), lambda b, n: (b, 0, n)),   # graph tile
            pl.BlockSpec((1, H, 1), lambda b, n: (b, 0, 0)),    # hidden-proj column
            pl.BlockSpec((H, H), lambda b, n: (0, 0)),          # wc (resident)
            pl.BlockSpec((H, 1), lambda b, n: (0, 0)),          # bc (resident)
            pl.BlockSpec((1, H), lambda b, n: (0, 0)),          # V  (resident)
        ],
        out_specs=pl.BlockSpec((1, 1, tn), lambda b, n: (b, 0, n)),
        compiler_params=pltpu.CompilerParams(
            dimension_semantics=("parallel", "parallel")),
        cost_estimate=cost,
    )(g, q_col, wc, bc, v)
    return u[:, 0, :]


def precompute_graph_projection(params, emb_graph, *, out_dtype=jnp.bfloat16):
    """Hoist the step-invariant Conv1d(H, H, 1) projection out of the per-step
    kernel (compute once per episode, reuse for every decode step).  Stored in
    bf16 by default: the decode kernel is HBM-bound, so halving the cached
    stream is the dominant win."""
    proj = jnp.einsum("oi,bin->bon",
                      params["wc"].astype(jnp.float32),
                      emb_graph.astype(jnp.float32))
    proj = proj + params["bc"].astype(jnp.float32)[None, :, None]
    return proj.astype(out_dtype)                                        # [B, H, N]


def attention_forward_cached(params, proj_emb_graph, hidden_decoder, *,
                             compute_dtype=None):
    """Per-step attention using the cached graph projection [B, H, N]."""
    B, H, N = proj_emb_graph.shape
    if compute_dtype is None:
        compute_dtype = _default_compute_dtype()
    sb = jnp.dtype(proj_emb_graph.dtype).itemsize
    grid_n, tn = _grid_and_tile(H, N, B, sb)

    v = params["v"].reshape(1, H).astype(jnp.float32)
    q_col = _hidden_projection(params, hidden_decoder)                   # [B, H, 1]

    cost = pl.CostEstimate(
        flops=2 * B * H * N,
        transcendentals=B * H * N,
        bytes_accessed=int(B * H * N * sb + B * H * 4 + H * 4 + B * N * 4),
    )

    kern = functools.partial(attention_cached_kernel, compute_dtype=compute_dtype)
    u = pl.pallas_call(
        kern,
        out_shape=jax.ShapeDtypeStruct((B, 1, N), jnp.float32),
        grid=(B, grid_n),
        in_specs=[
            pl.BlockSpec((1, H, tn), lambda b, n: (b, 0, n)),   # cached proj tile
            pl.BlockSpec((1, H, 1), lambda b, n: (b, 0, 0)),    # hidden-proj column
            pl.BlockSpec((1, H), lambda b, n: (0, 0)),          # V (resident)
        ],
        out_specs=pl.BlockSpec((1, 1, tn), lambda b, n: (b, 0, n)),
        compiler_params=pltpu.CompilerParams(
            dimension_semantics=("parallel", "parallel")),
        cost_estimate=cost,
    )(proj_emb_graph, q_col, v)
    return u[:, 0, :]


# --------------------------------------------------------------------------
# Params + pure-JAX reference
# --------------------------------------------------------------------------
def init_params(key, H):
    ks = jax.random.split(key, 5)
    inv = 1.0 / (H ** 0.5)

    def u(k, shape):
        return jax.random.uniform(k, shape, jnp.float32, -inv, inv)

    return dict(
        wc=u(ks[0], (H, H)),      # Conv1d(H, H, 1).weight[:, :, 0]
        bc=u(ks[1], (H,)),        # Conv1d bias
        wl=u(ks[2], (H, H)),      # Linear(H, H).weight
        bl=u(ks[3], (H,)),        # Linear bias
        v=u(ks[4], (1, 1, H)),    # V (zeros-init in PyTorch; random for a non-trivial check)
    )


def attention_reference(params, emb_graph, hidden_decoder):
    """Pure-JAX reference matching the PyTorch module forward."""
    proj_emb = (jnp.einsum("oi,bin->bon", params["wc"], emb_graph)
                + params["bc"][None, :, None])                     # [B, H, N]
    proj_hid = hidden_decoder @ params["wl"].T + params["bl"]       # [B, H]
    t = jnp.tanh(proj_emb + proj_hid[:, :, None])                   # [B, H, N]
    return jnp.einsum("h,bhn->bn", params["v"][0, 0], t)            # [B, N]


# --------------------------------------------------------------------------
if __name__ == "__main__":
    # --- small shape consistent with the module (B=2, hidden=32, N=8) ---
    B, H, N = 2, 32, 8
    k_par, k_g, k_h = jax.random.split(jax.random.PRNGKey(0), 3)
    params = init_params(k_par, H)
    emb_graph = jax.random.normal(k_g, (B, H, N), jnp.float32)       # Conv1d NCW layout
    hidden_decoder = jax.random.normal(k_h, (B, H), jnp.float32)
    u_ref = attention_reference(params, emb_graph, hidden_decoder)

    # 1) f32 stream / f32 compute: tight semantic validation of the fused kernel.
    u_f32 = attention_forward(params, emb_graph, hidden_decoder,
                              stream_dtype=jnp.float32, compute_dtype=jnp.float32)
    jax.block_until_ready(u_f32)
    assert u_f32.shape == (B, N), u_f32.shape
    assert jnp.allclose(u_f32, u_ref, atol=1e-3), (u_f32, u_ref)

    # 2) Default path: bf16 streaming + gen-aware compute dtype.
    u_def = attention_forward(params, emb_graph, hidden_decoder)
    jax.block_until_ready(u_def)
    assert jnp.allclose(u_def, u_ref, atol=5e-2), (u_def, u_ref)

    # 3) Decode-loop path: bf16 cached projection + per-step kernel.
    proj_g = precompute_graph_projection(params, emb_graph)
    u_cached = attention_forward_cached(params, proj_g, hidden_decoder)
    jax.block_until_ready(u_cached)
    assert jnp.allclose(u_cached, u_ref, atol=5e-2), (u_cached, u_ref)

    # 4) Exercise the N-tiling + v7x grid-split path (B=1 forces N to split
    #    into >= 2 tiles so both TensorCores would get work).
    B2, H2, N2 = 1, 128, 512
    k_par2, k_g2, k_h2 = jax.random.split(jax.random.PRNGKey(1), 3)
    params2 = init_params(k_par2, H2)
    emb_graph2 = jax.random.normal(k_g2, (B2, H2, N2), jnp.float32)
    hidden2 = jax.random.normal(k_h2, (B2, H2), jnp.float32)
    u_ref2 = attention_reference(params2, emb_graph2, hidden2)
    u2 = attention_forward(params2, emb_graph2, hidden2,
                           stream_dtype=jnp.float32, compute_dtype=jnp.float32)
    jax.block_until_ready(u2)
    assert u2.shape == (B2, N2), u2.shape
    assert jnp.allclose(u2, u_ref2, atol=1e-3), "tiled path mismatch"

    print("KERNEL_OK")
</pallas_src>

<mosaic_0001>
module attributes {stable_mosaic.version = 11 : i64} {
  func.func @attention_kernel(%arg0: i32, %arg1: i32, %arg2: memref<1x32x8xf32, #tpu.memory_space<vmem>>, %arg3: memref<1x32x1xf32, #tpu.memory_space<vmem>>, %arg4: memref<32x32xf32, #tpu.memory_space<vmem>>, %arg5: memref<32x1xf32, #tpu.memory_space<vmem>>, %arg6: memref<1x32xf32, #tpu.memory_space<vmem>>, %arg7: memref<1x1x8xf32, #tpu.memory_space<vmem>>) attributes {dimension_semantics = [#tpu.dimension_semantics<parallel>, #tpu.dimension_semantics<parallel>], iteration_bounds = array<i64: 2, 1>, scalar_prefetch = 0 : i64, scratch_operands = 0 : i64, tpu.core_type = #tpu.core_type<tc>, window_params = [{transform_indices = @transform_0, window_bounds = array<i64: 1, 32, 8>}, {transform_indices = @transform_1, window_bounds = array<i64: 1, 32, 1>}, {pipeline_mode = #tpu.pipeline_mode<synchronous>, transform_indices = @transform_2, window_bounds = array<i64: 32, 32>}, {pipeline_mode = #tpu.pipeline_mode<synchronous>, transform_indices = @transform_3, window_bounds = array<i64: 32, 1>}, {pipeline_mode = #tpu.pipeline_mode<synchronous>, transform_indices = @transform_4, window_bounds = array<i64: 1, 32>}, {transform_indices = @transform_5, window_bounds = array<i64: 1, 1, 8>}]} {
    %c0 = arith.constant 0 : index
    %c0_0 = arith.constant 0 : index
    %c0_1 = arith.constant 0 : index
    %0 = vector.load %arg2[%c0, %c0_0, %c0_1] : memref<1x32x8xf32, #tpu.memory_space<vmem>>, vector<1x32x8xf32>
    %1 = vector.shape_cast %0 : vector<1x32x8xf32> to vector<32x8xf32>
    %c0_2 = arith.constant 0 : index
    %c0_3 = arith.constant 0 : index
    %2 = vector.load %arg4[%c0_2, %c0_3] : memref<32x32xf32, #tpu.memory_space<vmem>>, vector<32x32xf32>
    %cst = arith.constant dense<0.000000e+00> : vector<32x8xf32>
    %3 = tpu.matmul %2, %1, %cst {dimension_numbers = #tpu.dot_dimension_numbers<[1], [0], [0], [1], [0, 0, 1, 1], [], []>} : vector<32x32xf32>, vector<32x8xf32>, vector<32x8xf32> -> vector<32x8xf32>
    %c0_4 = arith.constant 0 : index
    %c0_5 = arith.constant 0 : index
    %4 = vector.load %arg5[%c0_4, %c0_5] : memref<32x1xf32, #tpu.memory_space<vmem>>, vector<32x1xf32>
    %5 = vector.broadcast %4 : vector<32x1xf32> to vector<32x8xf32>
    %6 = arith.addf %3, %5 : vector<32x8xf32>
    %c0_6 = arith.constant 0 : index
    %c0_7 = arith.constant 0 : index
    %c0_8 = arith.constant 0 : index
    %7 = vector.load %arg3[%c0_6, %c0_7, %c0_8] : memref<1x32x1xf32, #tpu.memory_space<vmem>>, vector<1x32x1xf32>
    %8 = vector.shape_cast %7 : vector<1x32x1xf32> to vector<32x1xf32>
    %9 = vector.broadcast %8 : vector<32x1xf32> to vector<32x8xf32>
    %10 = arith.addf %6, %9 : vector<32x8xf32>
    %11 = math.tanh %10 : vector<32x8xf32>
    %c0_9 = arith.constant 0 : index
    %c0_10 = arith.constant 0 : index
    %12 = vector.load %arg6[%c0_9, %c0_10] : memref<1x32xf32, #tpu.memory_space<vmem>>, vector<1x32xf32>
    %cst_11 = arith.constant dense<0.000000e+00> : vector<1x8xf32>
    %13 = tpu.matmul %12, %11, %cst_11 {dimension_numbers = #tpu.dot_dimension_numbers<[1], [0], [0], [1], [0, 0, 1, 1], [], []>} : vector<1x32xf32>, vector<32x8xf32>, vector<1x8xf32> -> vector<1x8xf32>
    %c0_12 = arith.constant 0 : index
    %c0_13 = arith.constant 0 : index
    %c0_14 = arith.constant 0 : index
    %14 = vector.load %arg7[%c0_12, %c0_13, %c0_14] : memref<1x1x8xf32, #tpu.memory_space<vmem>>, vector<1x1x8xf32>
    %15 = vector.shape_cast %14 : vector<1x1x8xf32> to vector<1x8xf32>
    %16 = vector.shape_cast %13 : vector<1x8xf32> to vector<1x1x8xf32>
    tpu.vector_store %arg7[%c0_12, %c0_13, %c0_14], %16 {strides = array<i32>} : memref<1x1x8xf32, #tpu.memory_space<vmem>>, vector<1x1x8xf32>,
    return
  }
  func.func @transform_0(%arg0: i32, %arg1: i32) -> (i32, i32, i32) {
    %c0_i32 = arith.constant 0 : i32
    %c0_i32_0 = arith.constant 0 : i32
    return %arg0, %c0_i32, %arg1 : i32, i32, i32
  }
  func.func @transform_1(%arg0: i32, %arg1: i32) -> (i32, i32, i32) {
    %c0_i32 = arith.constant 0 : i32
    %c0_i32_0 = arith.constant 0 : i32
    %c0_i32_1 = arith.constant 0 : i32
    return %arg0, %c0_i32, %c0_i32_0 : i32, i32, i32
  }
  func.func @transform_2(%arg0: i32, %arg1: i32) -> (i32, i32) {
    %c0_i32 = arith.constant 0 : i32
    %c0_i32_0 = arith.constant 0 : i32
    %c0_i32_1 = arith.constant 0 : i32
    return %c0_i32, %c0_i32_0 : i32, i32
  }
  func.func @transform_3(%arg0: i32, %arg1: i32) -> (i32, i32) {
    %c0_i32 = arith.constant 0 : i32
    %c0_i32_0 = arith.constant 0 : i32
    %c0_i32_1 = arith.constant 0 : i32
    return %c0_i32, %c0_i32_0 : i32, i32
  }
  func.func @transform_4(%arg0: i32, %arg1: i32) -> (i32, i32) {
    %c0_i32 = arith.constant 0 : i32
    %c0_i32_0 = arith.constant 0 : i32
    %c0_i32_1 = arith.constant 0 : i32
    return %c0_i32, %c0_i32_0 : i32, i32
  }
  func.func @transform_5(%arg0: i32, %arg1: i32) -> (i32, i32, i32) {
    %c0_i32 = arith.constant 0 : i32
    %c0_i32_0 = arith.constant 0 : i32
    return %arg0, %c0_i32, %arg1 : i32, i32, i32
  }
}

</mosaic_0001>

<bundles_post_ra>
// kernel: tpu_custom_call.1
= control target key start
LH: loop header
LB: loop body
LE: loop exit
PB: predicated region body
PF: predicated region fallthrough
CT: control target
= control target key end

     0   :  { %10 = vsyncpa [#allocation3], 0  ;;  %s1003_s0 = inlined_call_operand.vmem [shape: f32[2,32,8], index: 0, kind: input, shape index: {}]   ;;  %s1004_s1 = inlined_call_operand.vmem [shape: f32[2,32,1], index: 1, kind: input, shape index: {}]   ;;  %s1005_s2 = inlined_call_operand.vmem [shape: f32[32,32], index: 2, kind: input, shape index: {}]   ;;  %s1006_s3 = inlined_call_operand.vmem [shape: f32[32,1], index: 3, kind: input, shape index: {}]   ;;  %s1007_s4 = inlined_call_operand.vmem [shape: f32[1,32], index: 4, kind: input, shape index: {}]   ;;  %s1008_s5 = inlined_call_operand.hbm [shape: f32[2,1,8], index: 5, kind: output, shape index: {}]  }
   0x1   :  { %12 = vsyncpa [#allocation3 + $0x1], 0  ;;  %s856_s18 = smov 0   ;;  %s858_s19 = smov 0  }
   0x2   :  { %s860_s20 = smov 0   ;;  %s862_s21 = smov 0  }
   0x3   :  { %s864_s22 = smov 0   ;;  %s866_s23 = smov 0  }
   0x4 LB: > { %s601_s24 = sadd.s32 4294967295, %s819_s23   ;;  %s602_s25 = sadd.s32 4294967294, %s819_s23   ;;  %s819_s23 = sphi %s866_s23, %s18_s23   ;;  %s815_s22 = sphi %s864_s22, %s1015_s22   ;;  %s811_s21 = sphi %s862_s21, %s1014_s21   ;;  %s807_s20 = sphi %s860_s20, %s1013_s20   ;;  %s803_s19 = sphi %s858_s19, %s1012_s19   ;;  %s799_s18 = sphi %s856_s18, %s1011_s18  }
   0x5   : > { %s30_s26 = sadd.s32 1, %s815_s22  ;;  %s156_s27 = sadd.s32 1, %s807_s20 }
   0x6   : > { %p32_p0 = scmp.ge.s32.totalorder %s30_s26, 2  ;;  %p166_p1 = scmp.ne.s32.totalorder %s807_s20, %s803_s19 }
   0x7   : > { %p167_p2 = scmp.eq.s32.totalorder %s601_s24, 1  ;;  %p172_p3 = scmp.ne.s32.totalorder %s803_s19, %s799_s18 }
   0x8   : > { %s1017_s26 = smov (%p32_p0, %s30_s26), 0  ;;  %p173_p5 = scmp.eq.s32.totalorder %s602_s25, 1 }
   0x9   : > { %p896_p4 = por %p167_p2, %p166_p1  ;;  %s151_s29 = ssub.s32 %s815_s22, %s1017_s26 }
   0xa   : > { %p605_p6 = scmp.ge.s32.totalorder %s819_s23, 1  ;;  %p154_p7 = scmp.eq.s32.totalorder %s151_s29, 0 }
   0xb   : > { %p903_p8 = por %p173_p5, %p172_p3  ;;  %p219_p9 = scmp.lt.s32.totalorder %s819_s23, 3 }
   0xc   : > { %s909_s6 = scalar_select %p154_p7, %s807_s20, %s156_s27  }
   0xd   : > { %p220_p10 = pnand %p605_p6, %p219_p9 }
   0xe   : > { %p254_p11 = scmp.lt.s32.totalorder (!%p220_p10), %s811_s21, 1  ;;  %v271_v0 = vld [vmem:[%s1005_s2] sm:$0xff] (!%p220_p10)  ;;  %vm299_vm0 = vcmask (!%p220_p10), 261120   ;;  %v821_v1 = vmov (!%p220_p10), 0   ;;  %v276_v3 = vld [vmem:[%s1006_s3 + $0x8] sm:$0xff] (!%p220_p10)  ;;  %v277_v11 = vld [vmem:[%s1006_s3 + $0x10] sm:$0xff] (!%p220_p10) }
   0xf   : > { %223 = sbr.rel (%p220_p10) target bundleno = 500 (0x1f4), region = 40  ;;  %641 = vmatprep.mubr.msk.f32.mxu0 (!%p220_p10), %vm299_vm0, %v271_v0  ;;  %732 = vset.pattern.permute.xlu1 (!%p220_p10), %v821_v1  ;;  %v275_v2 = vld [vmem:[%s1006_s3] sm:$0xff] (!%p220_p10)  ;;  %v278_v14 = vld [vmem:[%s1006_s3 + $0x18] sm:$0xff] (!%p220_p10)  ;;  %v272_v15 = vld [vmem:[%s1005_s2 + $0x8] sm:$0xff] (!%p220_p10)  ;;  %v822_v19 = vmov (!%p220_p10), 0.0|0.0   ;;  %vm823_vm1 = vmmov (!%p220_p10), 0  }
  0x10   : > { %731 = vset.pattern.permute.xlu0 (!%p220_p10), %v821_v1  ;;  %v273_v16 = vld [vmem:[%s1005_s2 + $0x10] sm:$0xff] (!%p220_p10)  ;;  %v274_v18 = vld [vmem:[%s1005_s2 + $0x18] sm:$0xff] (!%p220_p10)  ;;  %666 = vmatprep.subr.bf16.mxu1 (!%p220_p10), %v822_v19  ;;  %v824_v20 = vmov (!%p220_p10), 0.0   ;;  %v429_v47 = vld [vmem:[%s1007_s4] sm:$0x1] (!%p220_p10)  ;;  %s252_s24 = sand.u32 (!%p220_p10), 1, %s803_s19  }
  0x11   : > { %281 = vperm.xlu0 (!%p220_p10), %731, %v275_v2   ;;  %655 = vmatprep.mubr.msk.f32.mxu1 (!%p220_p10), %vm823_vm1, %v824_v20  ;;  %s615_s25 = sshll.u32 (!%p220_p10), %s811_s21, 4  ;;  %vm503_vm2 = vcmask (!%p220_p10), 57344   ;;  %s506_s10 = scalar_lea.sflag (!%p220_p10), [#allocation3], %s252_s24 }
  0x12   : > { %s956_s9 = scalar_lea.hbm (!%p220_p10), %s1008_s5, %s615_s25 }
  0x15   : > { %286 = vperm.xlu0 (!%p220_p10), %731, %v276_v3  }
  0x16   : > { %s255_s11 = scalar_select %p254_p11, %s811_s21, 1 }
  0x17   : > { %s825_s21 = smov [#allocation2]  }
  0x18   : > { %s618_s12 = sshll.u32 %s255_s11, 5 }
  0x19   : > { %s261_s17 = scalar_lea.vmem %s1003_s0, %s618_s12  ;;  %s266_s27 = scalar_lea.vmem %s1004_s1, %s618_s12  ;;  %291 = vperm.xlu0 %731, %v277_v11  }
  0x1a   : > { %v267_v4 = vld [vmem:[%s261_s17] sm:$0xff]  ;;  %v268_v5 = vld [vmem:[%s261_s17 + $0x8] sm:$0xff]  ;;  %v269_v6 = vld [vmem:[%s261_s17 + $0x10] sm:$0xff]  ;;  %s745_s12 = sshll.u32 %s825_s21, 4  ;;  %s746_s12 = int_to_ptr.vmem [resolvable:$false] %s745_s12 }
  0x1b   : > { %v658_v7 = vpack.c.bf16 %v268_v5, %v267_v4  ;;  %v270_v8 = vld [vmem:[%s261_s17 + $0x18] sm:$0xff]  ;;  %v397_v9 = vld [vmem:[%s266_s27] sm:$0xff]  ;;  %v398_v12 = vld [vmem:[%s266_s27 + $0x8] sm:$0xff]  ;;  %s747_s13 = scalar_lea.vmem %s746_s12, 32 }
  0x1c   : > { %v662_v10 = vpack.c.bf16 %v270_v8, %v269_v6  ;;  %403 = vperm.xlu1 %732, %v397_v9   ;;  %v399_v13 = vld [vmem:[%s266_s27 + $0x10] sm:$0xff]  ;;  %v400_v17 = vld [vmem:[%s266_s27 + $0x18] sm:$0xff]  ;;  %s253_s27 = scalar_lea.vmem [#allocation2], %s252_s24 }
  0x1d   : > { %659 = vmatprep.subr.bf16.mxu0 %v658_v7  ;;  %413 = vperm.xlu0 %731, %v399_v13   ;;  %s519_s29 = sshll.u32 %s253_s27, 4  ;;  %s958_s29 = int_to_ptr.vmem [resolvable:$true] %s519_s29 }
  0x1e   : > { %661 = vmatpush3.bf16.msra.mxu0 %v658_v7  ;;  %s741_s11 = scalar_lea.vmem %s958_s29, 16  ;;  %p748_p1 = scmp.lt.s32.totalorder %s958_s29, %s746_s12 }
  0x1f   : > { %663 = vmatprep.subr.bf16.mxu0 %v662_v10  ;;  %p742_p12 = scmp.ne.s32.totalorder %s958_s29, %s741_s11  ;;  %p749_p2 = scmp.lt.s32.totalorder %s747_s13, %s741_s11 }
  0x20   : > { %408 = vperm.xlu1 %732, %v398_v12  }
  0x21   : > { %p743_p13 = pnand %p742_p12, %p896_p4  ;;  %p750_p3 = por %p749_p2, %p748_p1 }
  0x22   : > { %665 = vmatpush3.bf16.msra.mxu0 %v662_v10 }
  0x23   : > { %p744_p0 = pneg %p743_p13 }
  0x24   : > { %296 = vperm.xlu1 %732, %v278_v14  }
  0x25   : > { %642 = vmatmul.mubr.msk.f32.vlgmr.msra.gmra.mrb[0].mxu0 %vm299_vm0, %v272_v15  ;;  %p751_p5 = pnand %p750_p3, %p744_p0 }
  0x26   : > { %644 = vmatprep.mubr.msk.f32.mxu0 %vm299_vm0, %v273_v16 }
  0x28   : > { %418 = vperm.xlu1 %732, %v400_v17  }
  0x29   : > { %645 = vmatmul.mubr.msk.f32.gmra.mrb[2].mxu0 %vm299_vm0, %v274_v18 }
  0x90   : > { %v282_v22 = vpop.permute.xlu0 %281 }
  0x94   : > { %v287_v24 = vpop.permute.xlu0 %286 }
  0x98   : > { %v292_v27 = vpop.permute.xlu0 %291 }
  0x9b   : > { %v404_v21 = vpop.permute.xlu1 %403 }
  0x9c   : > { %v414_v38 = vpop.permute.xlu0 %413 }
  0x9f   : > { %v409_v23 = vpop.permute.xlu1 %408 }
  0xa3   : > { %v297_v25 = vpop.permute.xlu1 %296 }
  0xa7   : > { %v419_v36 = vpop.permute.xlu1 %418 }
  0xf8   : > { %v643_v26 = vpop.f32.mrb[0].mxu0 }
  0xf9   : > { %v384_v28 = vadd.f32 %v643_v26, %v287_v24  ;;  %v378_v29 = vpop.f32.mrb[1].mxu0 }
  0xfa   : > { %v379_v30 = vadd.f32 %v378_v29, %v282_v22 }
  0xfb   : > { %v422_v31 = vadd.f32 %v409_v23, %v384_v28 }
  0xfc   : > { %v421_v32 = vadd.f32 %v404_v21, %v379_v30  ;;  %v646_v33 = vpop.f32.mrb[2].mxu0 }
  0xfd   : > { %733 = vtanh.f32 %v422_v31  ;;  %v394_v34 = vadd.f32 %v646_v33, %v297_v25  ;;  %v388_v35 = vpop.f32.mrb[3].mxu0 }
  0xfe   : > { %735 = vtanh.f32 %v421_v32  ;;  %v389_v37 = vadd.f32 %v388_v35, %v292_v27 }
  0xff   : > { %v424_v39 = vadd.f32 %v419_v36, %v394_v34 }
 0x100   : > { %v423_v40 = vadd.f32 %v414_v38, %v389_v37 }
 0x101   : > { %737 = vtanh.f32 %v424_v39 }
 0x102   : > { %739 = vtanh.f32 %v423_v40 }
 0x107   : > { %v734_v41 = vpop.eup %733 }
 0x108   : > { %v736_v42 = vpop.eup %735 }
 0x109   : > { %v667_v43 = vpack.c.bf16 %v734_v41, %v736_v42 }
 0x10b   : > { %v738_v44 = vpop.eup %737  ;;  %668 = vmatpush3.bf16.msra.mxu1 %v667_v43 }
 0x10c   : > { %v740_v45 = vpop.eup %739  ;;  %669 = vmatprep.subr.bf16.mxu1 %v822_v19 }
 0x10d   : > { %v670_v46 = vpack.c.bf16 %v738_v44, %v740_v45 }
 0x10f   : > { %671 = vmatpush3.bf16.msra.mxu1 %v670_v46 }
 0x112   : > { %656 = vmatmul.mubr.msk.f32.vlgmr.msra.gmra.mrb[0].mxu1 %vm299_vm0, %v429_v47 }
 0x1e5   : > { %v499_v48 = vpop.f32.mrb[0].mxu1 }
 0x1e6   : > { %504 = vst.msk [vmem:[%s253_s27] sm:$0x1] %vm503_vm2, %v499_v48  ;;  %v657_v49 = vpop.f32.mrb[1].mxu1 }
 0x1e7   : > { %754 = shalt.err (!%p751_p5)
}
 0x1e8   : > { %s755_s14 = scalar_lea.hbm %s956_s9, 16  ;;  %s759_s17 = scalar_lea.hbm %s1008_s5, 32 }
 0x1e9   : > { %p756_p6 = scmp.ne.s32.totalorder %s956_s9, %s755_s14  ;;  %p760_p10 = scmp.lt.u32.totalorder %s956_s9, %s1008_s5 }
 0x1ea   : > { %p761_p11 = scmp.lt.u32.totalorder %s759_s17, %s755_s14  ;;  %p763_p13 = scmp.lt.u32.totalorder %s755_s14, %s956_s9 }
 0x1eb   : > { %p757_p7 = pnand %p756_p6, %p896_p4 }
 0x1ec   : > { %p762_p12 = por %p761_p11, %p760_p10 }
 0x1ed   : > { %p758_p9 = pneg %p757_p7 }
 0x1ee   : > { %p764_p0 = por %p763_p13, %p762_p12 }
 0x1f0   : > { %p765_p1 = pnand %p764_p0, %p758_p9 }
 0x1f2   : > { %768 = shalt.err (!%p765_p1)
}
 0x1f3   : > { %672 = dma.vmem_to_hbm [thread:$0]  (%p896_p4), %s958_s29, 16, %s956_s9, %s506_s10  }
 0x1f4 PF: > { %p678_p2 = scmp.ge.s32.totalorder %s819_s23, 2  ;;  %s531_s27 = sand.u32 1, %s799_s18  }
 0x1f5   : > { %s532_s7 = scalar_lea.sflag [#allocation3], %s531_s27 }
 0x1f6   : > { %p675_p3 = pnand %p678_p2, %p903_p8 }
 0x1f8   : > { %794 = dma.done.wait (!%p675_p3), %s532_s7, 16  }
 0x1f9   : > { %796 = vsyncadd (!%p675_p3), %s532_s7, 4294967280  ;;  %s18_s23 = sadd.s32 1, %s819_s23   ;;  %s1011_s18 = smov %s803_s19 }
 0x1fa   : > { %p15_p5 = scmp.ge.s32.totalorder %s18_s23, 4   ;;  %s1012_s19 = smov %s807_s20 }
 0x1fb   : > { %s1013_s20 = smov %s909_s6  ;;  %s1014_s21 = smov %s815_s22 }
 0x1fc   : > { %s1015_s22 = smov %s1017_s26  ;;  %17 = sbr.rel (!%p15_p5) target bundleno = 4 (0x4), region = 78 }
 0x203   :  { %536 = vsyncpa [#allocation3], 1 }
 0x204   :  { %538 = vsyncpa [#allocation3 + $0x1], 1 }

</bundles_post_ra>
